<compile_context>
chip_gen: v7x
topology: tpu7x:2x2x1
jax: 0.10.0
libtpu: 0.0.40
codegen_flags: <defaults>
</compile_context>

<pallas_src>
import jax
import jax.numpy as jnp
from jax.experimental import pallas as pl
from jax.experimental.pallas import tpu as pltpu


def pos_enc(x_nchw: jax.Array, weight_1chw: jax.Array) -> jax.Array:
    """Pallas implementation of PosEnc.forward: x + weight (broadcast over N)."""
    N, C, H, W = x_nchw.shape
    assert weight_1chw.shape == (1, C, H, W), "weight must be (1, C, ks, ks)"
    HW = H * W
    CHW = C * HW

    # Prefer exact-vreg (rows, 128) slabs; fall back to (rows, HW) otherwise.
    # Both are row-major views of the same flat data, so tiling the weight
    # rows N times inside the kernel reproduces the batch broadcast exactly.
    if CHW % 128 == 0:
        lanes = 128
        w_rows = CHW // lanes
    else:
        lanes = HW
        w_rows = C

    x2d = x_nchw.reshape(N * w_rows, lanes)
    w2d = weight_1chw.reshape(w_rows, lanes)

    def kernel(x_ref, w_ref, o_ref):
        # x_ref: (N*w_rows, lanes) packed slab; w_ref: (w_rows, lanes) weight.
        # Broadcast the weight over the batch dimension in VMEM (whole-row
        # copies), then one dense VPU add and one unmasked full-slab store.
        w_full = jnp.tile(w_ref[...], (N, 1))          # (N*w_rows, lanes)
        o_ref[...] = (x_ref[...] + w_full).astype(o_ref.dtype)

    out2d = pl.pallas_call(
        kernel,
        out_shape=jax.ShapeDtypeStruct((N * w_rows, lanes), x_nchw.dtype),
        # Single invocation (no grid): whole arrays live in VMEM for the call.
        in_specs=[
            pl.BlockSpec(memory_space=pltpu.MemorySpace.VMEM),  # x slab
            pl.BlockSpec(memory_space=pltpu.MemorySpace.VMEM),  # weight
        ],
        out_specs=pl.BlockSpec(memory_space=pltpu.MemorySpace.VMEM),
        # Output reuses x's buffer (donation-friendly; shapes/dtypes match).
        input_output_aliases={0: 0},
    )(x2d, w2d)

    return out2d.reshape(N, C, H, W)


if __name__ == "__main__":
    # Module config: PosEnc(C=4, ks=16); input x must be (N, C, ks, ks).
    N, C, ks = 2, 4, 16

    key = jax.random.PRNGKey(0)
    kx, kw = jax.random.split(key)

    x = jax.random.normal(kx, (N, C, ks, ks), dtype=jnp.float32)
    # Deterministic stand-in for torch.randn(1, C, ks, ks)
    weight = jax.random.normal(kw, (1, C, ks, ks), dtype=jnp.float32)

    out = jax.block_until_ready(pos_enc(x, weight))

    # Reference check against plain JAX broadcasting add.
    ref = x + weight
    assert out.shape == (N, C, ks, ks)
    assert out.dtype == x.dtype
    assert jnp.allclose(out, ref, atol=1e-6, rtol=1e-6)

    print("KERNEL_OK")
</pallas_src>

<mosaic_0001>
module attributes {stable_mosaic.version = 11 : i64} {
  func.func @kernel(%arg0: memref<16x128xf32, #tpu.memory_space<vmem>>, %arg1: memref<8x128xf32, #tpu.memory_space<vmem>>, %arg2: memref<16x128xf32, #tpu.memory_space<vmem>>) attributes {dimension_semantics = [], scalar_prefetch = 0 : i64, scratch_operands = 0 : i64, tpu.core_type = #tpu.core_type<tc>} {
    %c0 = arith.constant 0 : index
    %c0_0 = arith.constant 0 : index
    %0 = vector.load %arg1[%c0, %c0_0] : memref<8x128xf32, #tpu.memory_space<vmem>>, vector<8x128xf32>
    %1 = tpu.concatenate %0, %0 in 0 : vector<8x128xf32>, vector<8x128xf32> -> vector<16x128xf32>
    %c0_1 = arith.constant 0 : index
    %c0_2 = arith.constant 0 : index
    %2 = vector.load %arg0[%c0_1, %c0_2] : memref<16x128xf32, #tpu.memory_space<vmem>>, vector<16x128xf32>
    %3 = arith.addf %2, %1 : vector<16x128xf32>
    %c0_3 = arith.constant 0 : index
    %c0_4 = arith.constant 0 : index
    %4 = vector.load %arg2[%c0_3, %c0_4] : memref<16x128xf32, #tpu.memory_space<vmem>>, vector<16x128xf32>
    tpu.vector_store %arg2[%c0_3, %c0_4], %3 {strides = array<i32>} : memref<16x128xf32, #tpu.memory_space<vmem>>, vector<16x128xf32>,
    return
  }
}

</mosaic_0001>

<bundles_post_ra>
// kernel: tpu_custom_call.1
= control target key start
LH: loop header
LB: loop body
LE: loop exit
PB: predicated region body
PF: predicated region fallthrough
CT: control target
= control target key end

     0   :  { %7 = vsyncpa [#allocation3], 0  ;;  %s154_s0 = inlined_call_operand.hbm [shape: f32[16,128], index: 0, kind: input, shape index: {}, may-alias: {0,2}]   ;;  %s155_s1 = inlined_call_operand.vmem [shape: f32[8,128], index: 1, kind: input, shape index: {}]   ;;  %s156_s2 = inlined_call_operand.hbm [shape: f32[16,128], index: 2, kind: output, shape index: {}, may-alias: {0,2}]  }
   0x1   :  { %8 = vsyncpa [#allocation4], 0  ;;  %s102_s9 = smov [#allocation2]   ;;  %s54_s13 = scalar_lea.hbm %s154_s0, 256 }
   0x2   :  { %s14_s10 = sshll.u32 %s102_s9, 4  ;;  %p55_p0 = scmp.ne.s32.totalorder %s154_s0, %s54_s13  ;;  %s15_s10 = int_to_ptr.vmem [resolvable:$true] %s14_s10 }
   0x3   :  { %p58_p1 = scmp.lt.u32.totalorder %s54_s13, %s154_s0 }
   0x5   :  { %p60_p2 = pnand %p58_p1, %p55_p0 }
   0x7   :  { %63 = shalt.err (!%p60_p2)
}
   0x8   :  { %s64_s18 = scalar_lea.vmem %s15_s10, 256  ;;  %p69_p4 = scmp.lt.s32.totalorder %s15_s10, %s15_s10 }
   0x9   :  { %p65_p3 = scmp.ne.s32.totalorder %s15_s10, %s64_s18  ;;  %p70_p5 = scmp.lt.s32.totalorder %s64_s18, %s64_s18 }
   0xb   :  { %p71_p6 = por %p70_p5, %p69_p4 }
   0xd   :  { %p72_p7 = pnand %p71_p6, %p65_p3 }
   0xf   :  { %75 = shalt.err (!%p72_p7)
}
  0x10   :  { %s103_s19 = smov 128   ;;  %s104_s20 = smov 8  }
  0x11   :  { %20 = dma.hbm_to_vmem [thread:$0]  %s154_s0, 256, %s15_s10, [#allocation3], %s103_s19, %s103_s19, %s104_s20  }
  0x12   :  { %98 = dma.done.wait [#allocation3], 256  }
  0x13   :  { %99 = vsyncadd [#allocation3], 4294967040  ;;  %s105_s23 = smov [#allocation5]   ;;  %v26_v0 = vld [vmem:[%s155_s1] sm:$0xff]  ;;  %v28_v2 = vld [vmem:[#allocation2 + $0x8] sm:$0xff] }
  0x14   :  { %s38_s24 = sshll.u32 %s105_s23, 4  ;;  %v27_v1 = vld [vmem:[#allocation2] sm:$0xff]  ;;  %v30_v4 = vadd.f32 %v28_v2, %v26_v0  ;;  %s39_s24 = int_to_ptr.vmem [resolvable:$true] %s38_s24 }
  0x15   :  { %v29_v3 = vadd.f32 %v27_v1, %v26_v0  ;;  %s76_s27 = scalar_lea.vmem %s39_s24, 256  ;;  %p81_p9 = scmp.lt.s32.totalorder %s39_s24, %s39_s24 }
  0x16   :  { %32 = vst [vmem:[#allocation5 + $0x8] sm:$0xff] %v30_v4  ;;  %p77_p8 = scmp.ne.s32.totalorder %s39_s24, %s76_s27  ;;  %p82_p10 = scmp.lt.s32.totalorder %s76_s27, %s76_s27 }
  0x17   :  { %31 = vst [vmem:[#allocation5] sm:$0xff] %v29_v3 }
  0x18   :  { %p83_p11 = por %p82_p10, %p81_p9 }
  0x1a   :  { %p84_p12 = pnand %p83_p11, %p77_p8 }
  0x1c   :  { %87 = shalt.err (!%p84_p12)
}
  0x1d   :  { %s88_s29 = scalar_lea.hbm %s156_s2, 256 }
  0x1e   :  { %p89_p13 = scmp.ne.s32.totalorder %s156_s2, %s88_s29  ;;  %p92_p0 = scmp.lt.u32.totalorder %s88_s29, %s156_s2 }
  0x20   :  { %p94_p1 = pnand %p92_p0, %p89_p13 }
  0x22   :  { %97 = shalt.err (!%p94_p1)
}
  0x23   :  { %44 = dma.vmem_to_hbm [thread:$0]  %s39_s24, 256, %s156_s2, [#allocation4], %s103_s19, %s103_s19, %s104_s20  }
  0x24   :  { %100 = dma.done.wait [#allocation4], 256  }
  0x25   :  { %101 = vsyncadd [#allocation4], 4294967040 }
  0x26   :  { %48 = vsyncpa [#allocation3], 1 }
  0x27   :  { %49 = vsyncpa [#allocation4], 1 }

</bundles_post_ra>
